<compile_context>
chip_gen: v6e
topology: v6e:2x2x1
jax: 0.10.0
libtpu: 0.0.40
codegen_flags: <defaults>
</compile_context>

<pallas_src>
import functools

import jax
import jax.numpy as jnp
from jax.experimental import pallas as pl
from jax.experimental.pallas import tpu as pltpu


def ann_mlp_kernel(x_ref,
                   w1_ref, b1_ref,
                   w2_ref, b2_ref,
                   w3_ref, b3_ref,
                   w4_ref, b4_ref,
                   o_ref):
    """Fused 4-layer MLP forward for one batch tile, feature-major layout.

    x_ref : (batch_tile, input_size)  f32  (batch on sublanes, features on lanes)
    w*_ref: (out, in)                 f32  PyTorch-native layout
    b*_ref: (out, 1) for layers 1-3; (1, 1) for layer 4
    o_ref : (1, batch_tile)           f32  lane-dense output row
    """
    f32 = jnp.float32

    # layer_1 + ReLU:  h[o, m] = sum_k w1[o, k] * x[m, k]  -> (out1, tile).
    # Same NT dot_general dimension numbers flash-attention uses for q @ k^T.
    h = jax.lax.dot_general(
        w1_ref[...], x_ref[...],
        dimension_numbers=(((1,), (1,)), ((), ())),
        preferred_element_type=f32)
    h = jnp.maximum(h + b1_ref[...], 0.0)
    # TODO(synk): training-mode dropout would use pltpu.prng_seed/prng_random_bits;
    # eval-mode dropout is the identity and is what is implemented here.

    # layer_2 + ReLU:  (out2, out1) @ (out1, tile) -> (out2, tile)
    h = jnp.dot(w2_ref[...], h, preferred_element_type=f32)
    h = jnp.maximum(h + b2_ref[...], 0.0)

    # layer_3 + ReLU
    h = jnp.dot(w3_ref[...], h, preferred_element_type=f32)
    h = jnp.maximum(h + b3_ref[...], 0.0)

    # layer_4 + Sigmoid.  w4_ref is zero-padded to 8 rows (one full sublane
    # group); row 0 is the real output row, so the (1, tile) result is already
    # lane-dense with no relayout.
    z = jnp.dot(w4_ref[...], h, preferred_element_type=f32)   # (8, tile)
    z = z[0:1, :] + b4_ref[...]                               # (1, tile)
    o_ref[...] = jax.nn.sigmoid(z).astype(o_ref.dtype)


def _round_up(v, m):
    return ((v + m - 1) // m) * m


def _choose_batch_tile(batch, max_tile=2048):
    """Largest lane-aligned tile (<= max_tile) giving an even number of grid
    steps when possible, so v7x's two TensorCores split the grid evenly."""
    half = _round_up(max(1, (batch + 1) // 2), 128)
    if half <= max_tile:
        return half                              # 1 tile, or 2 balanced tiles
    tile = max_tile
    while tile > 128 and pl.cdiv(batch, tile) % 2 == 1:
        tile -= 128                              # prefer an even step count
    return tile


@functools.partial(jax.jit, static_argnames=("batch_tile",))
def ann_forward(x, params, *, batch_tile=None):
    """x: [B, input_size] float32.  params: kernel-ready dict (see init_params)."""
    B, input_size = x.shape
    if batch_tile is None:
        batch_tile = _choose_batch_tile(B)
    assert batch_tile % 128 == 0, "batch_tile must be a multiple of 128 (lane width)"

    w1, b1 = params["layer_1"]
    w2, b2 = params["layer_2"]
    w3, b3 = params["layer_3"]
    w4p, b4 = params["layer_4"]

    num_tiles = pl.cdiv(B, batch_tile)

    x_spec = pl.BlockSpec((batch_tile, input_size), lambda i: (i, 0))
    resident = lambda i: (0, 0)   # weights/biases: same block every step -> stay in VMEM
    weight_specs = [pl.BlockSpec(arr.shape, resident)
                    for arr in (w1, b1, w2, b2, w3, b3, w4p, b4)]

    out = pl.pallas_call(
        ann_mlp_kernel,
        out_shape=jax.ShapeDtypeStruct((1, B), jnp.float32),
        grid_spec=pltpu.PrefetchScalarGridSpec(
            num_scalar_prefetch=0,
            grid=(num_tiles,),
            in_specs=[x_spec] + weight_specs,
            out_specs=pl.BlockSpec((1, batch_tile), lambda i: (0, i)),
        ),
        compiler_params=pltpu.CompilerParams(
            dimension_semantics=("parallel",),
        ),
    )(x, w1, b1, w2, b2, w3, b3, w4p, b4)

    return out.reshape(B, 1)


def init_params(key, input_size, layer1_size, layer2_size, layer3_size):
    """nn.Linear-style init, stored kernel-ready ONCE (no per-call prep):
    weights in PyTorch-native [out, in], biases as [out, 1]; the layer-4 weight
    row is zero-padded to 8 sublanes and its scalar bias kept as a (1, 1) tile."""
    dims = [(input_size, layer1_size),
            (layer1_size, layer2_size),
            (layer2_size, layer3_size),
            (layer3_size, 1)]
    names = ["layer_1", "layer_2", "layer_3", "layer_4"]
    params = {}
    for name, (fan_in, fan_out) in zip(names, dims):
        key, kw, kb = jax.random.split(key, 3)
        bound = 1.0 / jnp.sqrt(fan_in)            # nn.Linear default init scale
        w = jax.random.uniform(kw, (fan_out, fan_in), jnp.float32, -bound, bound)
        b = jax.random.uniform(kb, (fan_out, 1), jnp.float32, -bound, bound)
        params[name] = (w, b)
    # One-time layer-4 prep: pad the single output row to a full sublane group.
    w4, b4 = params["layer_4"]
    w4p = jnp.zeros((8, w4.shape[1]), jnp.float32).at[0:1, :].set(w4)
    params["layer_4"] = (w4p, b4)                 # b4 is already (1, 1)
    return params


def reference_forward(x, params):
    """Pure-JAX f32 reference matching the PyTorch ANN in eval mode."""
    hp = jax.lax.Precision.HIGHEST
    h = x
    for name in ("layer_1", "layer_2", "layer_3"):
        w, b = params[name]                       # w: (out, in), b: (out, 1)
        h = jnp.maximum(jnp.dot(h, w.T, precision=hp) + b[:, 0], 0.0)
    w4p, b4 = params["layer_4"]
    z = jnp.dot(h, w4p[0:1, :].T, precision=hp) + b4[0, 0]
    return jax.nn.sigmoid(z)                      # (B, 1)


if __name__ == "__main__":
    key = jax.random.PRNGKey(0)
    key, kx, kp = jax.random.split(key, 3)

    # Small shapes consistent with the module's forward.  batch is deliberately
    # not a multiple of the tile (exercises the boundary-block path); the auto
    # tile (640) gives an even 2-step parallel grid for v7x's two TensorCores.
    batch = 1200
    input_size, layer1_size, layer2_size, layer3_size = 32, 64, 32, 16
    dropout_rate = 0.2  # eval-mode dropout -> identity in the forward pass

    params = init_params(kp, input_size, layer1_size, layer2_size, layer3_size)
    x = jax.random.normal(kx, (batch, input_size), dtype=jnp.float32)

    y = ann_forward(x, params)
    y = jax.block_until_ready(y)

    y_ref = reference_forward(x, params)
    assert y.shape == (batch, 1)
    max_err = float(jnp.max(jnp.abs(y - y_ref)))
    assert max_err < 5e-3, f"max abs err too large: {max_err}"

    print("KERNEL_OK")
</pallas_src>

<mosaic_0001>
module attributes {stable_mosaic.version = 11 : i64} {
  func.func @ann_mlp_kernel(%arg0: i32, %arg1: memref<640x32xf32, #tpu.memory_space<vmem>>, %arg2: memref<64x32xf32, #tpu.memory_space<vmem>>, %arg3: memref<64x1xf32, #tpu.memory_space<vmem>>, %arg4: memref<32x64xf32, #tpu.memory_space<vmem>>, %arg5: memref<32x1xf32, #tpu.memory_space<vmem>>, %arg6: memref<16x32xf32, #tpu.memory_space<vmem>>, %arg7: memref<16x1xf32, #tpu.memory_space<vmem>>, %arg8: memref<8x16xf32, #tpu.memory_space<vmem>>, %arg9: memref<1x1xf32, #tpu.memory_space<vmem>>, %arg10: memref<1x640xf32, #tpu.memory_space<vmem>>) attributes {dimension_semantics = [#tpu.dimension_semantics<parallel>], iteration_bounds = array<i64: 2>, scalar_prefetch = 0 : i64, scratch_operands = 0 : i64, tpu.core_type = #tpu.core_type<tc>, window_params = [{transform_indices = @transform_0, window_bounds = array<i64: 640, 32>}, {pipeline_mode = #tpu.pipeline_mode<synchronous>, transform_indices = @transform_1, window_bounds = array<i64: 64, 32>}, {pipeline_mode = #tpu.pipeline_mode<synchronous>, transform_indices = @transform_2, window_bounds = array<i64: 64, 1>}, {pipeline_mode = #tpu.pipeline_mode<synchronous>, transform_indices = @transform_3, window_bounds = array<i64: 32, 64>}, {pipeline_mode = #tpu.pipeline_mode<synchronous>, transform_indices = @transform_4, window_bounds = array<i64: 32, 1>}, {pipeline_mode = #tpu.pipeline_mode<synchronous>, transform_indices = @transform_5, window_bounds = array<i64: 16, 32>}, {pipeline_mode = #tpu.pipeline_mode<synchronous>, transform_indices = @transform_6, window_bounds = array<i64: 16, 1>}, {pipeline_mode = #tpu.pipeline_mode<synchronous>, transform_indices = @transform_7, window_bounds = array<i64: 8, 16>}, {pipeline_mode = #tpu.pipeline_mode<synchronous>, transform_indices = @transform_8, window_bounds = array<i64: 1, 1>}, {transform_indices = @transform_9, window_bounds = array<i64: 1, 640>}]} {
    %c0 = arith.constant 0 : index
    %c0_0 = arith.constant 0 : index
    %0 = vector.load %arg2[%c0, %c0_0] : memref<64x32xf32, #tpu.memory_space<vmem>>, vector<64x32xf32>
    %c0_1 = arith.constant 0 : index
    %c0_2 = arith.constant 0 : index
    %1 = vector.load %arg1[%c0_1, %c0_2] : memref<640x32xf32, #tpu.memory_space<vmem>>, vector<640x32xf32>
    %cst = arith.constant dense<0.000000e+00> : vector<64x640xf32>
    %2 = tpu.matmul %0, %1, %cst {dimension_numbers = #tpu.dot_dimension_numbers<[1], [1], [0], [0], [0, 0, 1, 0], [], []>} : vector<64x32xf32>, vector<640x32xf32>, vector<64x640xf32> -> vector<64x640xf32>
    %c0_3 = arith.constant 0 : index
    %c0_4 = arith.constant 0 : index
    %3 = vector.load %arg3[%c0_3, %c0_4] : memref<64x1xf32, #tpu.memory_space<vmem>>, vector<64x1xf32>
    %4 = vector.broadcast %3 : vector<64x1xf32> to vector<64x640xf32>
    %5 = arith.addf %2, %4 : vector<64x640xf32>
    %cst_5 = arith.constant 0.000000e+00 : f32
    %6 = vector.broadcast %cst_5 : f32 to vector<64x640xf32>
    %7 = arith.maximumf %5, %6 : vector<64x640xf32>
    %c0_6 = arith.constant 0 : index
    %c0_7 = arith.constant 0 : index
    %8 = vector.load %arg4[%c0_6, %c0_7] : memref<32x64xf32, #tpu.memory_space<vmem>>, vector<32x64xf32>
    %cst_8 = arith.constant dense<0.000000e+00> : vector<32x640xf32>
    %9 = tpu.matmul %8, %7, %cst_8 {dimension_numbers = #tpu.dot_dimension_numbers<[1], [0], [0], [1], [0, 0, 1, 1], [], []>} : vector<32x64xf32>, vector<64x640xf32>, vector<32x640xf32> -> vector<32x640xf32>
    %c0_9 = arith.constant 0 : index
    %c0_10 = arith.constant 0 : index
    %10 = vector.load %arg5[%c0_9, %c0_10] : memref<32x1xf32, #tpu.memory_space<vmem>>, vector<32x1xf32>
    %11 = vector.broadcast %10 : vector<32x1xf32> to vector<32x640xf32>
    %12 = arith.addf %9, %11 : vector<32x640xf32>
    %cst_11 = arith.constant 0.000000e+00 : f32
    %13 = vector.broadcast %cst_11 : f32 to vector<32x640xf32>
    %14 = arith.maximumf %12, %13 : vector<32x640xf32>
    %c0_12 = arith.constant 0 : index
    %c0_13 = arith.constant 0 : index
    %15 = vector.load %arg6[%c0_12, %c0_13] : memref<16x32xf32, #tpu.memory_space<vmem>>, vector<16x32xf32>
    %cst_14 = arith.constant dense<0.000000e+00> : vector<16x640xf32>
    %16 = tpu.matmul %15, %14, %cst_14 {dimension_numbers = #tpu.dot_dimension_numbers<[1], [0], [0], [1], [0, 0, 1, 1], [], []>} : vector<16x32xf32>, vector<32x640xf32>, vector<16x640xf32> -> vector<16x640xf32>
    %c0_15 = arith.constant 0 : index
    %c0_16 = arith.constant 0 : index
    %17 = vector.load %arg7[%c0_15, %c0_16] : memref<16x1xf32, #tpu.memory_space<vmem>>, vector<16x1xf32>
    %18 = vector.broadcast %17 : vector<16x1xf32> to vector<16x640xf32>
    %19 = arith.addf %16, %18 : vector<16x640xf32>
    %cst_17 = arith.constant 0.000000e+00 : f32
    %20 = vector.broadcast %cst_17 : f32 to vector<16x640xf32>
    %21 = arith.maximumf %19, %20 : vector<16x640xf32>
    %c0_18 = arith.constant 0 : index
    %c0_19 = arith.constant 0 : index
    %22 = vector.load %arg8[%c0_18, %c0_19] : memref<8x16xf32, #tpu.memory_space<vmem>>, vector<8x16xf32>
    %cst_20 = arith.constant dense<0.000000e+00> : vector<8x640xf32>
    %23 = tpu.matmul %22, %21, %cst_20 {dimension_numbers = #tpu.dot_dimension_numbers<[1], [0], [0], [1], [0, 0, 1, 1], [], []>} : vector<8x16xf32>, vector<16x640xf32>, vector<8x640xf32> -> vector<8x640xf32>
    %24 = vector.extract_strided_slice %23 {offsets = [0, 0], sizes = [1, 640], strides = [1, 1]} : vector<8x640xf32> to vector<1x640xf32>
    %c0_21 = arith.constant 0 : index
    %c0_22 = arith.constant 0 : index
    %25 = vector.load %arg9[%c0_21, %c0_22] : memref<1x1xf32, #tpu.memory_space<vmem>>, vector<1x1xf32>
    %26 = vector.broadcast %25 : vector<1x1xf32> to vector<1x640xf32>
    %27 = arith.addf %24, %26 : vector<1x640xf32>
    %28 = arith.negf %27 : vector<1x640xf32>
    %29 = math.exp %28 : vector<1x640xf32>
    %cst_23 = arith.constant 1.000000e+00 : f32
    %30 = vector.broadcast %cst_23 : f32 to vector<1x640xf32>
    %31 = arith.addf %30, %29 : vector<1x640xf32>
    %32 = arith.divf %30, %31 : vector<1x640xf32>
    %c0_24 = arith.constant 0 : index
    %c0_25 = arith.constant 0 : index
    %33 = vector.load %arg10[%c0_24, %c0_25] : memref<1x640xf32, #tpu.memory_space<vmem>>, vector<1x640xf32>
    tpu.vector_store %arg10[%c0_24, %c0_25], %32 {strides = array<i32>} : memref<1x640xf32, #tpu.memory_space<vmem>>, vector<1x640xf32>,
    return
  }
  func.func @transform_0(%arg0: i32) -> (i32, i32) {
    %c0_i32 = arith.constant 0 : i32
    %c0_i32_0 = arith.constant 0 : i32
    return %arg0, %c0_i32 : i32, i32
  }
  func.func @transform_1(%arg0: i32) -> (i32, i32) {
    %c0_i32 = arith.constant 0 : i32
    %c0_i32_0 = arith.constant 0 : i32
    %c0_i32_1 = arith.constant 0 : i32
    return %c0_i32, %c0_i32_0 : i32, i32
  }
  func.func @transform_2(%arg0: i32) -> (i32, i32) {
    %c0_i32 = arith.constant 0 : i32
    %c0_i32_0 = arith.constant 0 : i32
    %c0_i32_1 = arith.constant 0 : i32
    return %c0_i32, %c0_i32_0 : i32, i32
  }
  func.func @transform_3(%arg0: i32) -> (i32, i32) {
    %c0_i32 = arith.constant 0 : i32
    %c0_i32_0 = arith.constant 0 : i32
    %c0_i32_1 = arith.constant 0 : i32
    return %c0_i32, %c0_i32_0 : i32, i32
  }
  func.func @transform_4(%arg0: i32) -> (i32, i32) {
    %c0_i32 = arith.constant 0 : i32
    %c0_i32_0 = arith.constant 0 : i32
    %c0_i32_1 = arith.constant 0 : i32
    return %c0_i32, %c0_i32_0 : i32, i32
  }
  func.func @transform_5(%arg0: i32) -> (i32, i32) {
    %c0_i32 = arith.constant 0 : i32
    %c0_i32_0 = arith.constant 0 : i32
    %c0_i32_1 = arith.constant 0 : i32
    return %c0_i32, %c0_i32_0 : i32, i32
  }
  func.func @transform_6(%arg0: i32) -> (i32, i32) {
    %c0_i32 = arith.constant 0 : i32
    %c0_i32_0 = arith.constant 0 : i32
    %c0_i32_1 = arith.constant 0 : i32
    return %c0_i32, %c0_i32_0 : i32, i32
  }
  func.func @transform_7(%arg0: i32) -> (i32, i32) {
    %c0_i32 = arith.constant 0 : i32
    %c0_i32_0 = arith.constant 0 : i32
    %c0_i32_1 = arith.constant 0 : i32
    return %c0_i32, %c0_i32_0 : i32, i32
  }
  func.func @transform_8(%arg0: i32) -> (i32, i32) {
    %c0_i32 = arith.constant 0 : i32
    %c0_i32_0 = arith.constant 0 : i32
    %c0_i32_1 = arith.constant 0 : i32
    return %c0_i32, %c0_i32_0 : i32, i32
  }
  func.func @transform_9(%arg0: i32) -> (i32, i32) {
    %c0_i32 = arith.constant 0 : i32
    %c0_i32_0 = arith.constant 0 : i32
    return %c0_i32, %arg0 : i32, i32
  }
}

</mosaic_0001>

<bundles_post_ra>
// kernel: ann_forward.1
= control target key start
LH: loop header
LB: loop body
LE: loop exit
PB: predicated region body
PF: predicated region fallthrough
CT: control target
= control target key end

     0   :  { %s3260_s0 = inlined_call_operand.vmem [shape: f32[1200,32], index: 0, kind: input, shape index: {}]   ;;  %s3261_s1 = inlined_call_operand.vmem [shape: f32[64,32], index: 1, kind: input, shape index: {}]   ;;  %s3262_s2 = inlined_call_operand.vmem [shape: f32[64,1], index: 2, kind: input, shape index: {}]   ;;  %s3263_s3 = inlined_call_operand.vmem [shape: f32[32,64], index: 3, kind: input, shape index: {}]   ;;  %s3264_s4 = inlined_call_operand.vmem [shape: f32[32,1], index: 4, kind: input, shape index: {}]   ;;  %s3265_s5 = inlined_call_operand.vmem [shape: f32[16,32], index: 5, kind: input, shape index: {}]   ;;  %s3266_s6 = inlined_call_operand.vmem [shape: f32[16,1], index: 6, kind: input, shape index: {}]   ;;  %s3267_s7 = inlined_call_operand.vmem [shape: f32[8,16], index: 7, kind: input, shape index: {}]   ;;  %s3268_s8 = inlined_call_operand.<no memory space> [shape: f32[1,1], index: 8, kind: input, shape index: {}]   ;;  %s3269_s9 = inlined_call_operand.hbm [shape: f32[1,1200], index: 9, kind: output, shape index: {}]  }
   0x1   :  { %v14_v0 = vstv %s3268_s8 }
   0x2   :  { %15 = vst [vmem:[#allocation2] sm:$0x1] %v14_v0 }
   0x3   :  { %16 = vsyncpa [#allocation4], 0 }
   0x4   :  { %18 = vsyncpa [#allocation4 + $0x1], 0  ;;  %s2647_s11 = smov 0   ;;  %s2649_s12 = smov 0  }
   0x5   :  { %s2651_s13 = smov 0   ;;  %s2653_s14 = smov 0  }
   0x6 LB: > { %s2096_s8 = sadd.s32 4294967295, %s2587_s14   ;;  %s2097_s15 = sadd.s32 4294967294, %s2587_s14   ;;  %s2587_s14 = sphi %s2653_s14, %s3275_s14   ;;  %s2583_s13 = sphi %s2651_s13, %s3274_s13   ;;  %s2579_s12 = sphi %s2649_s12, %s3273_s12   ;;  %s2575_s11 = sphi %s2647_s11, %s3272_s11  }
   0x7   : > { %s2670_s16 = sadd.s32 1, %s2587_s14   ;;  %s225_s17 = sadd.s32 1, %s2583_s13 }
   0x8   : > { %s222_s18 = ssub.s32 %s2587_s14, %s2670_s16  ;;  %p235_p0 = scmp.ne.s32.totalorder %s2583_s13, %s2579_s12 }
   0x9   : > { %p223_p1 = scmp.eq.s32.totalorder %s222_s18, 0  ;;  %p236_p2 = scmp.eq.s32.totalorder %s2096_s8, 1 }
   0xa   : > { %p241_p3 = scmp.ne.s32.totalorder %s2579_s12, %s2575_s11  ;;  %p242_p4 = scmp.eq.s32.totalorder %s2097_s15, 1 }
   0xb   : > { %s2680_s19 = scalar_select %p223_p1, %s2583_s13, %s225_s17  }
   0xc   : > { %p2682_p5 = por %p236_p2, %p235_p0  ;;  %p2686_p6 = por %p242_p4, %p241_p3 }
   0xd   : > { %p2100_p7 = scmp.ge.s32.totalorder %s2587_s14, 1  ;;  %p301_p8 = scmp.lt.s32.totalorder %s2587_s14, 3 }
   0xf   : > { %p302_p9 = pnand %p2100_p7, %p301_p8 }
  0x10   : > { %s2692_s22 = smul.u32 (!%p302_p9), 80, %s2096_s8  ;;  %s338_s23 = sand.u32 (!%p302_p9), 1, %s2579_s12  }
  0x11   : > { %305 = sbr.rel (%p302_p9) target bundleno = 1036 (0x40c), region = 56  ;;  %s2024_s30 = scalar_lea.sflag (!%p302_p9), [#allocation4], %s338_s23 }
  0x12   : > { %p346_p10 = scmp.lt.s32.totalorder (!%p302_p9), %s2692_s22, 149  ;;  %s2461_s24 = smul.u32 (!%p302_p9), 5, %s338_s23 }
  0x14   : > { %s340_s25 = scalar_lea.vmem (!%p302_p9), [#allocation3], %s2461_s24 }
  0x15   : > { %s2038_s26 = sshll.u32 (!%p302_p9), %s340_s25, 4  ;;  %s2039_s26 = int_to_ptr.vmem [resolvable:$true] %s2038_s26 }
  0x16   : > { %vm492_vm0 = vcmask 261120   ;;  %v2697_v1 = vld [vmem:[%s3261_s1] sm:$0xff]  ;;  %v2589_v2 = vmov 0   ;;  %v449_v3 = vld [vmem:[%s3262_s2 + $0x28] sm:$0xff]  ;;  %v451_v4 = vld [vmem:[%s3262_s2 + $0x38] sm:$0xff]  ;;  %s347_s29 = scalar_select %p346_p10, %s2692_s22, 149 }
  0x17   : > { %2268 = vmatprep.mubr.msk.f32.mxu0 %vm492_vm0, %v2697_v1  ;;  %2316 = vmatprep.mubr.msk.f32.mxu1 %vm492_vm0, %v2697_v1  ;;  %v448_v5 = vld [vmem:[%s3262_s2 + $0x20] sm:$0xff]  ;;  %v450_v36 = vld [vmem:[%s3262_s2 + $0x30] sm:$0xff]  ;;  %v447_v42 = vld [vmem:[%s3262_s2 + $0x18] sm:$0xff]  ;;  %vm1156_vm1 = vcmask 523264   ;;  %vm1712_vm2 = vcmask 130048   ;;  %vm2591_vm3 = vmmov 0  }
  0x18   : > { %2506 = vset.pattern.permute.xlu1 %v2589_v2  ;;  %2505 = vset.pattern.permute.xlu0 %v2589_v2  ;;  %s2101_s8 = sshll.u32 %s347_s29, 3  ;;  %v446_v39 = vld [vmem:[%s3262_s2 + $0x10] sm:$0xff]  ;;  %v444_v43 = vld [vmem:[%s3262_s2] sm:$0xff]  ;;  %v445_v48 = vld [vmem:[%s3262_s2 + $0x8] sm:$0xff]  ;;  %s2036_s29 = scalar_lea.hbm %s3269_s9, %s2692_s22 }
  0x19   : > { %479 = vperm.xlu1 %2506, %v449_v3   ;;  %489 = vperm.xlu0 %2505, %v451_v4   ;;  %s2717_s18 = scalar_lea.vmem %s3260_s0, %s2101_s8  ;;  %v1134_v49 = vld [vmem:[%s3264_s4 + $0x10] sm:$0xff]  ;;  %v1135_v54 = vld [vmem:[%s3264_s4 + $0x18] sm:$0xff]  ;;  %v1132_v55 = vld [vmem:[%s3264_s4] sm:$0xff]  ;;  %s2527_s10 = scalar_lea.vmem %s2039_s26, 80 }
  0x1a   : > { %v395_v6 = vld [vmem:[%s2717_s18 + $0xf8] sm:$0xff]  ;;  %v394_v10 = vld [vmem:[%s2717_s18 + $0xf0] sm:$0xff]  ;;  %v393_v14 = vld [vmem:[%s2717_s18 + $0xe8] sm:$0xff]  ;;  %p2528_p11 = scmp.ne.s32.totalorder %s2039_s26, %s2527_s10  ;;  %s2593_s8 = smov [#allocation3]  }
  0x1b   : > { %v427_v7 = vld [vmem:[%s2717_s18 + $0x1f8] sm:$0xff]  ;;  %2236 = vmatprep.subr.msk.mxu0 %vm492_vm0, %v395_v6  ;;  %v426_v11 = vld [vmem:[%s2717_s18 + $0x1f0] sm:$0xff]  ;;  %v425_v15 = vld [vmem:[%s2717_s18 + $0x1e8] sm:$0xff]  ;;  %s2531_s15 = sshll.u32 %s2593_s8, 4  ;;  %s2532_s15 = int_to_ptr.vmem [resolvable:$false] %s2531_s15 }
  0x1c   : > { %v379_v8 = vld [vmem:[%s2717_s18 + $0x78] sm:$0xff]  ;;  %2284 = vmatprep.subr.msk.mxu1 %vm492_vm0, %v427_v7  ;;  %v378_v12 = vld [vmem:[%s2717_s18 + $0x70] sm:$0xff]  ;;  %v377_v16 = vld [vmem:[%s2717_s18 + $0x68] sm:$0xff]  ;;  %p2529_p12 = pnand %p2528_p11, %p2682_p5  ;;  %s2533_s17 = scalar_lea.vmem %s2532_s15, 160 }
  0x1d   : > { %474 = vperm.xlu1 %2506, %v448_v5   ;;  %v411_v9 = vld [vmem:[%s2717_s18 + $0x178] sm:$0xff]  ;;  %2237 = vmatpush3.xpose.msk.msra.mxu0 %vm492_vm0, %v379_v8  ;;  %v410_v13 = vld [vmem:[%s2717_s18 + $0x170] sm:$0xff]  ;;  %v409_v17 = vld [vmem:[%s2717_s18 + $0x168] sm:$0xff]  ;;  %p2534_p0 = scmp.lt.s32.totalorder %s2039_s26, %s2532_s15  ;;  %p2535_p1 = scmp.lt.s32.totalorder %s2533_s17, %s2527_s10 }
  0x1e   : > { %2285 = vmatpush3.xpose.msk.msra.mxu1 %vm492_vm0, %v411_v9  ;;  %2238 = vmatprep.subr.msk.mxu0 %vm492_vm0, %v394_v10  ;;  %v392_v18 = vld [vmem:[%s2717_s18 + $0xe0] sm:$0xff]  ;;  %v391_v22 = vld [vmem:[%s2717_s18 + $0xd8] sm:$0xff]  ;;  %v390_v26 = vld [vmem:[%s2717_s18 + $0xd0] sm:$0xff]  ;;  %p2530_p13 = pneg %p2529_p12 }
  0x1f   : > { %2286 = vmatprep.subr.msk.mxu1 %vm492_vm0, %v426_v11  ;;  %v424_v19 = vld [vmem:[%s2717_s18 + $0x1e0] sm:$0xff]  ;;  %v423_v23 = vld [vmem:[%s2717_s18 + $0x1d8] sm:$0xff]  ;;  %v422_v27 = vld [vmem:[%s2717_s18 + $0x1d0] sm:$0xff]  ;;  %484 = vperm.xlu0 %2505, %v450_v36   ;;  %p2536_p2 = por %p2535_p1, %p2534_p0 }
  0x20   : > { %v376_v20 = vld [vmem:[%s2717_s18 + $0x60] sm:$0xff]  ;;  %v375_v24 = vld [vmem:[%s2717_s18 + $0x58] sm:$0xff]  ;;  %v374_v28 = vld [vmem:[%s2717_s18 + $0x50] sm:$0xff] }
  0x21   : > { %2239 = vmatpush3.xpose.msk.msra.mxu0 %vm492_vm0, %v378_v12  ;;  %v408_v21 = vld [vmem:[%s2717_s18 + $0x160] sm:$0xff]  ;;  %v407_v25 = vld [vmem:[%s2717_s18 + $0x158] sm:$0xff]  ;;  %v406_v29 = vld [vmem:[%s2717_s18 + $0x150] sm:$0xff]  ;;  %464 = vperm.xlu1 %2506, %v446_v39   ;;  %p2537_p3 = pnand %p2536_p2, %p2530_p13 }
  0x22   : > { %2287 = vmatpush3.xpose.msk.msra.mxu1 %vm492_vm0, %v410_v13  ;;  %2240 = vmatprep.subr.msk.mxu0 %vm492_vm0, %v393_v14  ;;  %v389_v30 = vld [vmem:[%s2717_s18 + $0xc8] sm:$0xff]  ;;  %v388_v34 = vld [vmem:[%s2717_s18 + $0xc0] sm:$0xff]  ;;  %v387_v40 = vld [vmem:[%s2717_s18 + $0xb8] sm:$0xff] }
  0x23   : > { %2288 = vmatprep.subr.msk.mxu1 %vm492_vm0, %v425_v15  ;;  %v421_v31 = vld [vmem:[%s2717_s18 + $0x1c8] sm:$0xff]  ;;  %v420_v35 = vld [vmem:[%s2717_s18 + $0x1c0] sm:$0xff]  ;;  %v419_v41 = vld [vmem:[%s2717_s18 + $0x1b8] sm:$0xff]  ;;  %469 = vperm.xlu0 %2505, %v447_v42  }
  0x24   : > { %v373_v32 = vld [vmem:[%s2717_s18 + $0x48] sm:$0xff]  ;;  %v372_v37 = vld [vmem:[%s2717_s18 + $0x40] sm:$0xff]  ;;  %v371_v44 = vld [vmem:[%s2717_s18 + $0x38] sm:$0xff] }
  0x25   : > { %2241 = vmatpush3.xpose.msk.msra.mxu0 %vm492_vm0, %v377_v16  ;;  %v405_v33 = vld [vmem:[%s2717_s18 + $0x148] sm:$0xff]  ;;  %v404_v38 = vld [vmem:[%s2717_s18 + $0x140] sm:$0xff]  ;;  %v403_v45 = vld [vmem:[%s2717_s18 + $0x138] sm:$0xff]  ;;  %454 = vperm.xlu1 %2506, %v444_v43  }
  0x26   : > { %2289 = vmatpush3.xpose.msk.msra.mxu1 %vm492_vm0, %v409_v17  ;;  %2242 = vmatprep.subr.msk.mxu0 %vm492_vm0, %v392_v18  ;;  %v386_v46 = vld [vmem:[%s2717_s18 + $0xb0] sm:$0xff]  ;;  %v385_v52 = vld [vmem:[%s2717_s18 + $0xa8] sm:$0xff]  ;;  %v384_v58 = vld [vmem:[%s2717_s18 + $0xa0] sm:$0xff] }
  0x27   : > { %2290 = vmatprep.subr.msk.mxu1 %vm492_vm0, %v424_v19  ;;  %v418_v47 = vld [vmem:[%s2717_s18 + $0x1b0] sm:$0xff]  ;;  %v417_v53 = vld [vmem:[%s2717_s18 + $0x1a8] sm:$0xff]  ;;  %459 = vperm.xlu0 %2505, %v445_v48   ;;  %v416_v59 = vld [vmem:[%s2717_s18 + $0x1a0] sm:$0xff] }
  0x28   : > { %v370_v50 = vld [vmem:[%s2717_s18 + $0x30] sm:$0xff]  ;;  %v369_v56 = vld [vmem:[%s2717_s18 + $0x28] sm:$0xff]  ;;  %v1454_v61 = vld [vmem:[%s3266_s6] sm:$0xff] }
  0x29   : > { %2243 = vmatpush3.xpose.msk.msra.mxu0 %vm492_vm0, %v376_v20  ;;  %v402_v51 = vld [vmem:[%s2717_s18 + $0x130] sm:$0xff]  ;;  %1148 = vperm.xlu1 %2506, %v1134_v49   ;;  %v401_v57 = vld [vmem:[%s2717_s18 + $0x128] sm:$0xff]  ;;  %v368_v62 = vld [vmem:[%s2717_s18 + $0x20] sm:$0xff] }
  0x2a   : > { %2291 = vmatpush3.xpose.msk.msra.mxu1 %vm492_vm0, %v408_v21  ;;  %2244 = vmatprep.subr.msk.mxu0 %vm492_vm0, %v391_v22  ;;  %v1133_v60 = vld [vmem:[%s3264_s4 + $0x8] sm:$0xff]  ;;  %v400_v63 = vld [vmem:[%s2717_s18 + $0x120] sm:$0xff]  ;;  %v383_v0 = vld [vmem:[%s2717_s18 + $0x98] sm:$0xff] }
  0x2b   : > { %2292 = vmatprep.subr.msk.mxu1 %vm492_vm0, %v423_v23  ;;  %1153 = vperm.xlu0 %2505, %v1135_v54   ;;  %v415_v2 = vld [vmem:[%s2717_s18 + $0x198] sm:$0xff]  ;;  %v1455_v3 = vld [vmem:[%s3266_s6 + $0x8] sm:$0xff]  ;;  %v382_v6 = vld [vmem:[%s2717_s18 + $0x90] sm:$0xff] }
  0x2c   : > { %v367_v4 = vld [vmem:[%s2717_s18 + $0x18] sm:$0xff]  ;;  %v414_v7 = vld [vmem:[%s2717_s18 + $0x190] sm:$0xff]  ;;  %v1928_v8 = vld [vmem:[#allocation2] sm:$0x1] }
  0x2d   : > { %2245 = vmatpush3.xpose.msk.msra.mxu0 %vm492_vm0, %v375_v24  ;;  %1138 = vperm.xlu1 %2506, %v1132_v55   ;;  %v399_v5 = vld [vmem:[%s2717_s18 + $0x118] sm:$0xff]  ;;  %v366_v9 = vld [vmem:[%s2717_s18 + $0x10] sm:$0xff]  ;;  %v381_v11 = vld [vmem:[%s2717_s18 + $0x88] sm:$0xff] }
  0x2e   : > { %2293 = vmatpush3.xpose.msk.msra.mxu1 %vm492_vm0, %v407_v25  ;;  %2246 = vmatprep.subr.msk.mxu0 %vm492_vm0, %v390_v26  ;;  %v398_v10 = vld [vmem:[%s2717_s18 + $0x110] sm:$0xff]  ;;  %v413_v12 = vld [vmem:[%s2717_s18 + $0x188] sm:$0xff]  ;;  %v380_v15 = vld [vmem:[%s2717_s18 + $0x80] sm:$0xff] }
  0x2f   : > { %2294 = vmatprep.subr.msk.mxu1 %vm492_vm0, %v422_v27  ;;  %1143 = vperm.xlu0 %2505, %v1133_v60   ;;  %v365_v13 = vld [vmem:[%s2717_s18 + $0x8] sm:$0xff]  ;;  %v412_v16 = vld [vmem:[%s2717_s18 + $0x180] sm:$0xff]  ;;  %v443_v19 = vld [vmem:[%s2717_s18 + $0x278] sm:$0xff] }
  0x30   : > { %v397_v14 = vld [vmem:[%s2717_s18 + $0x108] sm:$0xff]  ;;  %v364_v17 = vld [vmem:[%s2717_s18] sm:$0xff]  ;;  %v442_v21 = vld [vmem:[%s2717_s18 + $0x270] sm:$0xff] }
  0x31   : > { %2247 = vmatpush3.xpose.msk.msra.mxu0 %vm492_vm0, %v374_v28  ;;  %1458 = vperm.xlu1 %2506, %v1454_v61   ;;  %v396_v18 = vld [vmem:[%s2717_s18 + $0x100] sm:$0xff]  ;;  %v2885_v20 = vld [vmem:[%s3261_s1 + $0x8] sm:$0xff]  ;;  %v2901_v22 = vld [vmem:[%s3261_s1 + $0x10] sm:$0xff] }
  0x32   : > { %2295 = vmatpush3.xpose.msk.msra.mxu1 %vm492_vm0, %v406_v29  ;;  %2248 = vmatprep.subr.msk.mxu0 %vm492_vm0, %v389_v30  ;;  %v441_v23 = vld [vmem:[%s2717_s18 + $0x268] sm:$0xff]  ;;  %v2917_v24 = vld [vmem:[%s3261_s1 + $0x18] sm:$0xff]  ;;  %v440_v25 = vld [vmem:[%s2717_s18 + $0x260] sm:$0xff] }
  0x33   : > { %2296 = vmatprep.subr.msk.mxu1 %vm492_vm0, %v421_v31  ;;  %1463 = vperm.xlu0 %2505, %v1455_v3   ;;  %v2933_v26 = vld [vmem:[%s3261_s1 + $0x20] sm:$0xff]  ;;  %v439_v27 = vld [vmem:[%s2717_s18 + $0x258] sm:$0xff]  ;;  %v361_v28 = vld [vmem:[%s3261_s1 + $0x28] sm:$0xff] }
  0x34   : > { %v438_v29 = vld [vmem:[%s2717_s18 + $0x250] sm:$0xff]  ;;  %v437_v31 = vld [vmem:[%s2717_s18 + $0x248] sm:$0xff] }
  0x35   : > { %2249 = vmatpush3.xpose.msk.msra.mxu0 %vm492_vm0, %v373_v32  ;;  %v362_v30 = vld [vmem:[%s3261_s1 + $0x30] sm:$0xff]  ;;  %v363_v32 = vld [vmem:[%s3261_s1 + $0x38] sm:$0xff]  ;;  %v433_v36 = vld [vmem:[%s2717_s18 + $0x228] sm:$0xff] }
  0x36   : > { %2297 = vmatpush3.xpose.msk.msra.mxu1 %vm492_vm0, %v405_v33  ;;  %2250 = vmatprep.subr.msk.mxu0 %vm492_vm0, %v388_v34  ;;  %v436_v33 = vld [vmem:[%s2717_s18 + $0x240] sm:$0xff]  ;;  %v435_v34 = vld [vmem:[%s2717_s18 + $0x238] sm:$0xff]  ;;  %v429_v39 = vld [vmem:[%s2717_s18 + $0x208] sm:$0xff] }
  0x37   : > { %2298 = vmatprep.subr.msk.mxu1 %vm492_vm0, %v420_v35  ;;  %1931 = vperm.xlu0 %2505, %v1928_v8   ;;  %v434_v35 = vld [vmem:[%s2717_s18 + $0x230] sm:$0xff] }
  0x39   : > { %2251 = vmatpush3.xpose.msk.msra.mxu0 %vm492_vm0, %v372_v37  ;;  %v432_v37 = vld [vmem:[%s2717_s18 + $0x220] sm:$0xff] }
  0x3a   : > { %2299 = vmatpush3.xpose.msk.msra.mxu1 %vm492_vm0, %v404_v38  ;;  %2252 = vmatprep.subr.msk.mxu0 %vm492_vm0, %v387_v40  ;;  %v430_v38 = vld [vmem:[%s2717_s18 + $0x210] sm:$0xff]  ;;  %v428_v40 = vld [vmem:[%s2717_s18 + $0x200] sm:$0xff] }
  0x3b   : > { %2300 = vmatprep.subr.msk.mxu1 %vm492_vm0, %v419_v41  ;;  %v2590_v41 = vmov 0.0  }
  0x3d   : > { %2253 = vmatpush3.xpose.msk.msra.mxu0 %vm492_vm0, %v371_v44 }
  0x3e   : > { %2301 = vmatpush3.xpose.msk.msra.mxu1 %vm492_vm0, %v403_v45  ;;  %2254 = vmatprep.subr.msk.mxu0 %vm492_vm0, %v386_v46 }
  0x3f   : > { %2302 = vmatprep.subr.msk.mxu1 %vm492_vm0, %v418_v47 }
  0x41   : > { %2255 = vmatpush3.xpose.msk.msra.mxu0 %vm492_vm0, %v370_v50 }
  0x42   : > { %2303 = vmatpush3.xpose.msk.msra.mxu1 %vm492_vm0, %v402_v51  ;;  %2256 = vmatprep.subr.msk.mxu0 %vm492_vm0, %v385_v52 }
  0x43   : > { %2304 = vmatprep.subr.msk.mxu1 %vm492_vm0, %v417_v53 }
  0x45   : > { %2257 = vmatpush3.xpose.msk.msra.mxu0 %vm492_vm0, %v369_v56 }
  0x46   : > { %2305 = vmatpush3.xpose.msk.msra.mxu1 %vm492_vm0, %v401_v57  ;;  %2258 = vmatprep.subr.msk.mxu0 %vm492_vm0, %v384_v58 }
  0x47   : > { %2306 = vmatprep.subr.msk.mxu1 %vm492_vm0, %v416_v59 }
  0x49   : > { %2259 = vmatpush3.xpose.msk.msra.mxu0 %vm492_vm0, %v368_v62 }
  0x4a   : > { %2307 = vmatpush3.xpose.msk.msra.mxu1 %vm492_vm0, %v400_v63  ;;  %2260 = vmatprep.subr.msk.mxu0 %vm492_vm0, %v383_v0 }
  0x4b   : > { %2308 = vmatprep.subr.msk.mxu1 %vm492_vm0, %v415_v2 }
  0x4d   : > { %2261 = vmatpush3.xpose.msk.msra.mxu0 %vm492_vm0, %v367_v4 }
  0x4e   : > { %2309 = vmatpush3.xpose.msk.msra.mxu1 %vm492_vm0, %v399_v5  ;;  %2262 = vmatprep.subr.msk.mxu0 %vm492_vm0, %v382_v6 }
  0x4f   : > { %2310 = vmatprep.subr.msk.mxu1 %vm492_vm0, %v414_v7 }
  0x51   : > { %2263 = vmatpush3.xpose.msk.msra.mxu0 %vm492_vm0, %v366_v9 }
  0x52   : > { %2311 = vmatpush3.xpose.msk.msra.mxu1 %vm492_vm0, %v398_v10  ;;  %2264 = vmatprep.subr.msk.mxu0 %vm492_vm0, %v381_v11 }
  0x53   : > { %2312 = vmatprep.subr.msk.mxu1 %vm492_vm0, %v413_v12 }
  0x55   : > { %2265 = vmatpush3.xpose.msk.msra.mxu0 %vm492_vm0, %v365_v13 }
  0x56   : > { %2313 = vmatpush3.xpose.msk.msra.mxu1 %vm492_vm0, %v397_v14  ;;  %2266 = vmatprep.subr.msk.mxu0 %vm492_vm0, %v380_v15 }
  0x57   : > { %2314 = vmatprep.subr.msk.mxu1 %vm492_vm0, %v412_v16 }
  0x59   : > { %2267 = vmatpush3.xpose.msk.msra.mxu0 %vm492_vm0, %v364_v17 }
  0x5a   : > { %2315 = vmatpush3.xpose.msk.msra.mxu1 %vm492_vm0, %v396_v18  ;;  %2377 = vmatprep.subr.msk.mxu0 %vm492_vm0, %v443_v19 }
  0x5c   : > { %2269 = vmatmul.mubr.msk.f32.vlgmr.msra.gmra.mxu0 %vm492_vm0, %v2697_v1 }
  0x5d   : > { %2317 = vmatmul.mubr.msk.f32.vlgmr.msra.gmra.mxu1 %vm492_vm0, %v2697_v1  ;;  %2378 = vmatpush3.xpose.msk.msra.mxu0 %vm492_vm0, %v443_v19 }
  0x5e   : > { %2270 = vmatprep.mubr.msk.f32.mxu0 %vm492_vm0, %v2885_v20  ;;  %2318 = vmatprep.mubr.msk.f32.mxu1 %vm492_vm0, %v2885_v20 }
  0x5f   : > { %2379 = vmatprep.subr.msk.mxu0 %vm492_vm0, %v442_v21 }
  0x60   : > { %2271 = vmatmul.mubr.msk.f32.gmra.mxu0 %vm492_vm0, %v2885_v20 }
  0x61   : > { %2319 = vmatmul.mubr.msk.f32.gmra.mxu1 %vm492_vm0, %v2885_v20  ;;  %2380 = vmatpush3.xpose.msk.msra.mxu0 %vm492_vm0, %v442_v21 }
  0x62   : > { %2272 = vmatprep.mubr.msk.f32.mxu0 %vm492_vm0, %v2901_v22  ;;  %2320 = vmatprep.mubr.msk.f32.mxu1 %vm492_vm0, %v2901_v22 }
  0x63   : > { %2381 = vmatprep.subr.msk.mxu0 %vm492_vm0, %v441_v23 }
  0x64   : > { %2273 = vmatmul.mubr.msk.f32.gmra.mxu0 %vm492_vm0, %v2901_v22 }
  0x65   : > { %2321 = vmatmul.mubr.msk.f32.gmra.mxu1 %vm492_vm0, %v2901_v22  ;;  %2382 = vmatpush3.xpose.msk.msra.mxu0 %vm492_vm0, %v441_v23 }
  0x66   : > { %2274 = vmatprep.mubr.msk.f32.mxu0 %vm492_vm0, %v2917_v24  ;;  %2322 = vmatprep.mubr.msk.f32.mxu1 %vm492_vm0, %v2917_v24 }
  0x67   : > { %2383 = vmatprep.subr.msk.mxu0 %vm492_vm0, %v440_v25 }
  0x68   : > { %2275 = vmatmul.mubr.msk.f32.gmra.mxu0 %vm492_vm0, %v2917_v24 }
  0x69   : > { %2323 = vmatmul.mubr.msk.f32.gmra.mxu1 %vm492_vm0, %v2917_v24  ;;  %2384 = vmatpush3.xpose.msk.msra.mxu0 %vm492_vm0, %v440_v25 }
  0x6a   : > { %2276 = vmatprep.mubr.msk.f32.mxu0 %vm492_vm0, %v2933_v26  ;;  %2324 = vmatprep.mubr.msk.f32.mxu1 %vm492_vm0, %v2933_v26 }
  0x6b   : > { %2385 = vmatprep.subr.msk.mxu0 %vm492_vm0, %v439_v27 }
  0x6c   : > { %2277 = vmatmul.mubr.msk.f32.gmra.mxu0 %vm492_vm0, %v2933_v26 }
  0x6d   : > { %2325 = vmatmul.mubr.msk.f32.gmra.mxu1 %vm492_vm0, %v2933_v26  ;;  %2386 = vmatpush3.xpose.msk.msra.mxu0 %vm492_vm0, %v439_v27 }
  0x6e   : > { %2278 = vmatprep.mubr.msk.f32.mxu0 %vm492_vm0, %v361_v28  ;;  %2326 = vmatprep.mubr.msk.f32.mxu1 %vm492_vm0, %v361_v28 }
  0x6f   : > { %2387 = vmatprep.subr.msk.mxu0 %vm492_vm0, %v438_v29 }
  0x70   : > { %2279 = vmatmul.mubr.msk.f32.gmra.mxu0 %vm492_vm0, %v361_v28 }
  0x71   : > { %2327 = vmatmul.mubr.msk.f32.gmra.mxu1 %vm492_vm0, %v361_v28  ;;  %2388 = vmatpush3.xpose.msk.msra.mxu0 %vm492_vm0, %v438_v29 }
  0x72   : > { %2280 = vmatprep.mubr.msk.f32.mxu0 %vm492_vm0, %v362_v30  ;;  %2328 = vmatprep.mubr.msk.f32.mxu1 %vm492_vm0, %v362_v30 }
  0x73   : > { %2389 = vmatprep.subr.msk.mxu0 %vm492_vm0, %v437_v31 }
  0x74   : > { %2281 = vmatmul.mubr.msk.f32.gmra.mxu0 %vm492_vm0, %v362_v30 }
  0x75   : > { %2329 = vmatmul.mubr.msk.f32.gmra.mxu1 %vm492_vm0, %v362_v30  ;;  %2390 = vmatpush3.xpose.msk.msra.mxu0 %vm492_vm0, %v437_v31 }
  0x76   : > { %2282 = vmatprep.mubr.msk.f32.mxu0 %vm492_vm0, %v363_v32  ;;  %2330 = vmatprep.mubr.msk.f32.mxu1 %vm492_vm0, %v363_v32 }
  0x77   : > { %2391 = vmatprep.subr.msk.mxu0 %vm492_vm0, %v436_v33 }
  0x78   : > { %2283 = vmatmul.mubr.msk.f32.gmra.mxu0 %vm492_vm0, %v363_v32 }
  0x79   : > { %2331 = vmatmul.mubr.msk.f32.gmra.mxu1 %vm492_vm0, %v363_v32  ;;  %2392 = vmatpush3.xpose.msk.msra.mxu0 %vm492_vm0, %v436_v33 }
  0x7a   : > { %2409 = vmatprep.mubr.msk.f32.mxu0 %vm492_vm0, %v2697_v1  ;;  %2393 = vmatprep.subr.msk.mxu0 %vm492_vm0, %v435_v34  ;;  %v431_v1 = vld [vmem:[%s2717_s18 + $0x218] sm:$0xff] }
  0x7b   : > { %1233 = vmatprep.mubr.f32.mxu1 %v2590_v41 }
  0x7d   : > { %2394 = vmatpush3.xpose.msk.msra.mxu0 %vm492_vm0, %v435_v34 }
  0x7e   : > { %2395 = vmatprep.subr.msk.mxu0 %vm492_vm0, %v434_v35 }
  0x81   : > { %2396 = vmatpush3.xpose.msk.msra.mxu0 %vm492_vm0, %v434_v35 }
  0x82   : > { %2397 = vmatprep.subr.msk.mxu0 %vm492_vm0, %v433_v36 }
  0x85   : > { %2398 = vmatpush3.xpose.msk.msra.mxu0 %vm492_vm0, %v433_v36 }
  0x86   : > { %2399 = vmatprep.subr.msk.mxu0 %vm492_vm0, %v432_v37 }
  0x89   : > { %2400 = vmatpush3.xpose.msk.msra.mxu0 %vm492_vm0, %v432_v37 }
  0x8a   : > { %2401 = vmatprep.subr.msk.mxu0 %vm492_vm0, %v431_v1 }
  0x8d   : > { %2402 = vmatpush3.xpose.msk.msra.mxu0 %vm492_vm0, %v431_v1 }
  0x8e   : > { %2403 = vmatprep.subr.msk.mxu0 %vm492_vm0, %v430_v38 }
  0x91   : > { %2404 = vmatpush3.xpose.msk.msra.mxu0 %vm492_vm0, %v430_v38 }
  0x92   : > { %2405 = vmatprep.subr.msk.mxu0 %vm492_vm0, %v429_v39 }
  0x94   : > { %v3046_v62 = vpop.permute.xlu0 %489  ;;  %v3048_v0 = vpop.permute.xlu1 %479 }
  0x95   : > { %2406 = vmatpush3.xpose.msk.msra.mxu0 %vm492_vm0, %v429_v39 }
  0x96   : > { %2407 = vmatprep.subr.msk.mxu0 %vm492_vm0, %v428_v40 }
  0x98   : > { %v3056_v8 = vpop.permute.xlu1 %474 }
  0x99   : > { %2408 = vmatpush3.xpose.msk.msra.mxu0 %vm492_vm0, %v428_v40 }
  0x9a   : > { %v3052_v5 = vpop.permute.xlu0 %484 }
  0x9c   : > { %2410 = vmatmul.mubr.msk.f32.vlgmr.msra.gmra.mxu0 %vm492_vm0, %v2885_v20  ;;  %v3065_v21 = vpop.permute.xlu1 %464 }
  0x9d   : > { %2412 = vmatprep.mubr.msk.f32.mxu0 %vm492_vm0, %v2901_v22 }
  0x9e   : > { %v3061_v15 = vpop.permute.xlu0 %469 }
  0xa0   : > { %2413 = vmatmul.mubr.msk.f32.gmra.mxu0 %vm492_vm0, %v2917_v24  ;;  %v3075_v35 = vpop.permute.xlu1 %454 }
  0xa1   : > { %2415 = vmatprep.mubr.msk.f32.mxu0 %vm492_vm0, %v2933_v26 }
  0xa2   : > { %v3071_v29 = vpop.permute.xlu0 %459 }
  0xa4   : > { %2416 = vmatmul.mubr.msk.f32.gmra.mxu0 %vm492_vm0, %v361_v28 }
  0xa5   : > { %2418 = vmatprep.mubr.msk.f32.mxu0 %vm492_vm0, %v362_v30 }
  0xa8   : > { %2419 = vmatmul.mubr.msk.f32.gmra.mxu0 %vm492_vm0, %v363_v32 }
  0xa9   : > { %1613 = vmatprep.mubr.f32.mxu0 %v2590_v41 }
 0x11c   : > { %v3020_v42 = vpop.f32.mrf.mxu0 }
 0x11d   : > { %v3022_v43 = vpop.f32.mrf.mxu1 }
 0x11e   : > { %v3024_v44 = vpop.f32.mrf.mxu0 }
 0x11f   : > { %v3026_v45 = vpop.f32.mrf.mxu1 }
 0x120   : > { %v3028_v46 = vpop.f32.mrf.mxu0 }
 0x121   : > { %v3030_v47 = vpop.f32.mrf.mxu1  ;;  %v830_v39 = vadd.f32 %v3028_v46, %v3071_v29 }
 0x122   : > { %v831_v48 = vpop.f32.mrf.mxu0 }
 0x123   : > { %v3032_v49 = vpop.f32.mrf.mxu1  ;;  %v832_v1 = vadd.f32 %v831_v48, %v3071_v29 }
 0x124   : > { %v835_v50 = vpop.f32.mrf.mxu0 }
 0x125   : > { %v3034_v51 = vpop.f32.mrf.mxu1  ;;  %v836_v36 = vadd.f32 %v835_v50, %v3065_v21  ;;  %v824_v50 = vadd.f32 %v3020_v42, %v3075_v35  ;;  %v3092_v42 = vld [vmem:[%s3263_s3] sm:$0xff] }
 0x126   : > { %v837_v52 = vpop.f32.mrf.mxu0 }
 0x127   : > { %v3036_v53 = vpop.f32.mrf.mxu1  ;;  %v838_v33 = vadd.f32 %v837_v52, %v3065_v21  ;;  %v826_v52 = vadd.f32 %v3024_v44, %v3075_v35  ;;  %v1088_v44 = vmax.f32 %v824_v50, 0.0 }
 0x128   : > { %v841_v54 = vpop.f32.mrf.mxu0 }
 0x129   : > { %v3038_v55 = vpop.f32.mrf.mxu1  ;;  %v842_v30 = vadd.f32 %v841_v54, %v3061_v15 }
 0x12a   : > { %v843_v56 = vpop.f32.mrf.mxu0 }
 0x12b   : > { %v3040_v57 = vpop.f32.mrf.mxu1  ;;  %v844_v27 = vadd.f32 %v843_v56, %v3061_v15  ;;  %v1103_v40 = vmax.f32 %v842_v30, 0.0  ;;  %v1099_v56 = vmax.f32 %v838_v33, 0.0 }
 0x12c   : > { %v847_v58 = vpop.f32.mrf.mxu0 }
 0x12d   : > { %v3042_v59 = vpop.f32.mrf.mxu1  ;;  %v848_v25 = vadd.f32 %v847_v58, %v3056_v8  ;;  %v1104_v38 = vmax.f32 %v844_v27, 0.0  ;;  %v1098_v58 = vmax.f32 %v836_v36, 0.0  ;;  %v937_v27 = vadd.f32 %v3022_v43, %v3075_v35 }
 0x12e   : > { %v849_v60 = vpop.f32.mrf.mxu0 }
 0x12f   : > { %v3044_v61 = vpop.f32.mrf.mxu1  ;;  %v850_v24 = vadd.f32 %v849_v60, %v3056_v8  ;;  %v1108_v37 = vmax.f32 %v848_v25, 0.0  ;;  %v1094_v60 = vmax.f32 %v832_v1, 0.0 }
 0x130   : > { %v853_v63 = vpop.f32.mrf.mxu0 }
 0x131   : > { %v3050_v2 = vpop.f32.mrf.mxu1  ;;  %v854_v22 = vadd.f32 %v853_v63, %v3048_v0  ;;  %v1109_v34 = vmax.f32 %v850_v24, 0.0  ;;  %v1093_v63 = vmax.f32 %v830_v39, 0.0  ;;  %v943_v24 = vadd.f32 %v3030_v47, %v3071_v29  ;;  %v3140_v47 = vld [vmem:[%s3263_s3 + $0x18] sm:$0xff] }
 0x132   : > { %v855_v3 = vpop.f32.mrf.mxu0 }
 0x133   : > { %v3054_v6 = vpop.f32.mrf.mxu1  ;;  %v856_v18 = vadd.f32 %v855_v3, %v3048_v0  ;;  %v1113_v31 = vmax.f32 %v854_v22, 0.0  ;;  %v1089_v3 = vmax.f32 %v826_v52, 0.0  ;;  %v949_v22 = vadd.f32 %v3034_v51, %v3065_v21 }
 0x134   : > { %v859_v4 = vpop.f32.mrf.mxu0  ;;  %v939_v51 = vadd.f32 %v3026_v45, %v3075_v35  ;;  %v1095_v45 = vmax.f32 %v943_v24, 0.0 }
 0x135   : > { %v972_v12 = vpop.f32.mrf.mxu1  ;;  %v860_v16 = vadd.f32 %v859_v4, %v3052_v5  ;;  %v1114_v28 = vmax.f32 %v856_v18, 0.0  ;;  %v955_v18 = vadd.f32 %v3038_v55, %v3061_v15  ;;  %v3124_v55 = vld [vmem:[%s3263_s3 + $0x10] sm:$0xff] }
 0x136   : > { %v861_v7 = vpop.f32.mrf.mxu0  ;;  %v1091_v30 = vmax.f32 %v939_v51, 0.0 }
 0x137   : > { %v862_v10 = vadd.f32 %v861_v7, %v3052_v5  ;;  %v974_v23 = vpop.f32.mrf.mxu1  ;;  %v1118_v26 = vmax.f32 %v860_v16, 0.0  ;;  %v973_v7 = vadd.f32 %v972_v12, %v3052_v5  ;;  %v963_v12 = vadd.f32 %v3044_v61, %v3056_v8 }
 0x138   : > { %v865_v9 = vpop.f32.mrf.mxu0  ;;  %v975_v4 = vadd.f32 %v974_v23, %v3052_v5  ;;  %v961_v16 = vadd.f32 %v3042_v59, %v3056_v8  ;;  %v957_v61 = vadd.f32 %v3040_v57, %v3061_v15  ;;  %v951_v59 = vadd.f32 %v3036_v53, %v3065_v21 }
 0x139   : > { %v866_v11 = vadd.f32 %v865_v9, %v3046_v62  ;;  %v1119_v19 = vmax.f32 %v862_v10, 0.0  ;;  %v978_v32 = vpop.f32.mrf.mxu1  ;;  %v969_v9 = vadd.f32 %v3054_v6, %v3048_v0  ;;  %v945_v53 = vadd.f32 %v3032_v49, %v3071_v29 }
 0x13a   : > { %v867_v13 = vpop.f32.mrf.mxu0  ;;  %v979_v46 = vadd.f32 %v978_v32, %v3046_v62  ;;  %v1110_v23 = vmax.f32 %v961_v16, 0.0  ;;  %v1106_v57 = vmax.f32 %v957_v61, 0.0  ;;  %v1105_v25 = vmax.f32 %v955_v18, 0.0 }
 0x13b   : > { %v868_v14 = vadd.f32 %v867_v13, %v3046_v62  ;;  %v1123_v17 = vmax.f32 %v866_v11, 0.0  ;;  %v980_v54 = vpop.f32.mrf.mxu1  ;;  %v967_v11 = vadd.f32 %v3050_v2, %v3048_v0  ;;  %v3108_v2 = vld [vmem:[%s3263_s3 + $0x8] sm:$0xff]  ;;  %v1116_v6 = vmax.f32 %v969_v9, 0.0 }
 0x13c   : > { %v981_v48 = vadd.f32 %v980_v54, %v3046_v62  ;;  %v1125_v13 = vmax.f32 %v979_v46, 0.0  ;;  %v1096_v49 = vmax.f32 %v945_v53, 0.0 }
 0x13d   : > { %v1124_v20 = vmax.f32 %v868_v14, 0.0  ;;  %v1121_v14 = vmax.f32 %v975_v4, 0.0 }
 0x13e   : > { %v1126_v10 = vmax.f32 %v981_v48, 0.0 }
 0x13f   : > { %1185 = vmatprep.subr.mxu1 %v1124_v20  ;;  %v1111_v20 = vmax.f32 %v963_v12, 0.0 }
 0x140   : > { %1186 = vmatpush1.msra.mxu1 %v1123_v17  ;;  %v1120_v17 = vmax.f32 %v973_v7, 0.0 }
 0x141   : > { %1187 = vmatprep.subr.mxu1 %v1119_v19  ;;  %v1115_v19 = vmax.f32 %v967_v11, 0.0 }
 0x142   : > { %1188 = vmatpush1.msra.mxu1 %v1118_v26  ;;  %v1101_v26 = vmax.f32 %v951_v59, 0.0 }
 0x143   : > { %1189 = vmatprep.subr.mxu1 %v1114_v28  ;;  %v1100_v28 = vmax.f32 %v949_v22, 0.0 }
 0x144   : > { %1190 = vmatpush1.msra.mxu1 %v1113_v31  ;;  %v1090_v31 = vmax.f32 %v937_v27, 0.0 }
 0x145   : > { %1191 = vmatprep.subr.mxu1 %v1109_v34 }
 0x146   : > { %1192 = vmatpush1.msra.mxu1 %v1108_v37 }
 0x147   : > { %1193 = vmatprep.subr.mxu1 %v1104_v38 }
 0x148   : > { %1194 = vmatpush1.msra.mxu1 %v1103_v40 }
 0x149   : > { %1195 = vmatprep.subr.mxu1 %v1099_v56 }
 0x14a   : > { %1196 = vmatpush1.msra.mxu1 %v1098_v58 }
 0x14b   : > { %1197 = vmatprep.subr.mxu1 %v1094_v60 }
 0x14c   : > { %1198 = vmatpush1.msra.mxu1 %v1093_v63 }
 0x14d   : > { %1199 = vmatprep.subr.mxu1 %v1089_v3 }
 0x14e   : > { %1200 = vmatpush1.msra.mxu1 %v1088_v44  ;;  %v3173_v44 = vpop.permute.xlu0 %1153 }
 0x14f   : > { %2206 = vmatmul.mubr.msk.f32.vlgmr.msra.gmra.mxu1 %vm1156_vm1, %v3092_v42  ;;  %1274 = vmatprep.subr.mxu1 %v1126_v10 }
 0x150   : > { %1275 = vmatpush1.msra.mxu1 %v1125_v13  ;;  %1239 = vmatprep.mubr.f32.mxu1 %v2590_v41 }
 0x151   : > { %1276 = vmatprep.subr.mxu1 %v1121_v14 }
 0x152   : > { %1277 = vmatpush1.msra.mxu1 %v1120_v17  ;;  %v3180_v14 = vpop.permute.xlu0 %1143 }
 0x153   : > { %2207 = vmatmul.mubr.msk.f32.gmra.mxu1 %vm1156_vm1, %v3108_v2  ;;  %1278 = vmatprep.subr.mxu1 %v1116_v6 }
 0x154   : > { %1279 = vmatpush1.msra.mxu1 %v1115_v19  ;;  %1245 = vmatprep.mubr.f32.mxu1 %v2590_v41 }
 0x155   : > { %1280 = vmatprep.subr.mxu1 %v1111_v20 }
 0x156   : > { %1281 = vmatpush1.msra.mxu1 %v1110_v23 }
 0x157   : > { %2208 = vmatmul.mubr.msk.f32.gmra.mxu1 %vm1156_vm1, %v3124_v55  ;;  %1282 = vmatprep.subr.mxu1 %v1106_v57 }
 0x158   : > { %1283 = vmatpush1.msra.mxu1 %v1105_v25  ;;  %1251 = vmatprep.mubr.f32.mxu1 %v2590_v41 }
 0x159   : > { %1284 = vmatprep.subr.mxu1 %v1101_v26 }
 0x15a   : > { %1285 = vmatpush1.msra.mxu1 %v1100_v28  ;;  %v1452_v28 = vld [vmem:[%s3265_s5] sm:$0xff] }
 0x15b   : > { %2209 = vmatmul.mubr.msk.f32.gmra.mxu1 %vm1156_vm1, %v3140_v47  ;;  %1286 = vmatprep.subr.mxu1 %v1096_v49 }
 0x15c   : > { %v2411_v43 = vpop.f32.mrf.mxu0  ;;  %1287 = vmatpush1.msra.mxu1 %v1095_v45  ;;  %1322 = vmatprep.mubr.f32.mxu1 %v2590_v41  ;;  %v1453_v45 = vld [vmem:[%s3265_s5 + $0x8] sm:$0xff] }
 0x15d   : > { %1288 = vmatprep.subr.mxu1 %v1091_v30 }
 0x15e   : > { %v1049_v32 = vpop.f32.mrf.mxu0  ;;  %1289 = vmatpush1.msra.mxu1 %v1090_v31 }
 0x15f   : > { %2210 = vmatmul.mubr.msk.f32.vlgmr.msra.gmra.mxu1 %vm1156_vm1, %v3092_v42 }
 0x160   : > { %v2414_v33 = vpop.f32.mrf.mxu0  ;;  %1328 = vmatprep.mubr.f32.mxu1 %v2590_v41 }
 0x161   : > { %v1065_v58 = vadd.f32 %v2414_v33, %v3061_v15 }
 0x162   : > { %v1059_v34 = vpop.f32.mrf.mxu0 }
 0x163   : > { %2211 = vmatmul.mubr.msk.f32.gmra.mxu1 %vm1156_vm1, %v3108_v2  ;;  %v1107_v48 = vmax.f32 %v1065_v58, 0.0 }
 0x164   : > { %v2417_v36 = vpop.f32.mrf.mxu0  ;;  %1334 = vmatprep.mubr.f32.mxu1 %v2590_v41 }
 0x165   : > { %v1075_v40 = vadd.f32 %v2417_v36, %v3048_v0  ;;  %v1060_v0 = vadd.f32 %v1059_v34, %v3065_v21 }
 0x166   : > { %v1069_v37 = vpop.f32.mrf.mxu0 }
 0x167   : > { %2212 = vmatmul.mubr.msk.f32.gmra.mxu1 %vm1156_vm1, %v3124_v55  ;;  %v1070_v56 = vadd.f32 %v1069_v37, %v3056_v8  ;;  %v1050_v8 = vadd.f32 %v1049_v32, %v3075_v35  ;;  %v1102_v63 = vmax.f32 %v1060_v0, 0.0 }
 0x168   : > { %v2420_v1 = vpop.f32.mrf.mxu0  ;;  %1340 = vmatprep.mubr.f32.mxu1 %v2590_v41 }
 0x169   : > { %v1085_v38 = vadd.f32 %v2420_v1, %v3046_v62  ;;  %v1117_v62 = vmax.f32 %v1075_v40, 0.0  ;;  %v1112_v60 = vmax.f32 %v1070_v56, 0.0  ;;  %v1092_v15 = vmax.f32 %v1050_v8, 0.0 }
 0x16a   : > { %v1079_v39 = vpop.f32.mrf.mxu0 }
 0x16b   : > { %v1127_v54 = vmax.f32 %v1085_v38, 0.0  ;;  %v1080_v52 = vadd.f32 %v1079_v39, %v3052_v5  ;;  %2213 = vmatmul.mubr.msk.f32.gmra.mxu1 %vm1156_vm1, %v3140_v47  ;;  %v1055_v5 = vadd.f32 %v2411_v43, %v3071_v29 }
 0x16c   : > { %2437 = vmatprep.mubr.msk.f32.mxu1 %vm1156_vm1, %v3092_v42  ;;  %v3175_v42 = vpop.permute.xlu1 %1148 }
 0x16d   : > { %v1122_v50 = vmax.f32 %v1080_v52, 0.0  ;;  %2421 = vmatprep.subr.mxu1 %v1127_v54  ;;  %v1097_v46 = vmax.f32 %v1055_v5, 0.0 }
 0x16e   : > { %2422 = vmatpush3.msra.mxu1 %v1127_v54 }
 0x16f   : > { %2423 = vmatprep.subr.mxu1 %v1122_v50 }
 0x170   : > { %2424 = vmatpush3.msra.mxu1 %v1122_v50  ;;  %v3184_v6 = vpop.permute.xlu1 %1138 }
 0x171   : > { %2425 = vmatprep.subr.mxu1 %v1117_v62 }
 0x172   : > { %2426 = vmatpush3.msra.mxu1 %v1117_v62 }
 0x173   : > { %2427 = vmatprep.subr.mxu1 %v1112_v60 }
 0x174   : > { %2428 = vmatpush3.msra.mxu1 %v1112_v60 }
 0x175   : > { %2429 = vmatprep.subr.mxu1 %v1107_v48 }
 0x176   : > { %2430 = vmatpush3.msra.mxu1 %v1107_v48 }
 0x177   : > { %2431 = vmatprep.subr.mxu1 %v1102_v63 }
 0x178   : > { %2432 = vmatpush3.msra.mxu1 %v1102_v63 }
 0x179   : > { %2433 = vmatprep.subr.mxu1 %v1097_v46 }
 0x17a   : > { %2434 = vmatpush3.msra.mxu1 %v1097_v46 }
 0x17b   : > { %2435 = vmatprep.subr.mxu1 %v1092_v15 }
 0x17c   : > { %2436 = vmatpush3.msra.mxu1 %v1092_v15 }
 0x17d   : > { %2438 = vmatmul.mubr.msk.f32.vlgmr.msra.gmra.mxu1 %vm1156_vm1, %v3108_v2 }
 0x17e   : > { %2440 = vmatprep.mubr.msk.f32.mxu1 %vm1156_vm1, %v3124_v55 }
 0x181   : > { %2441 = vmatmul.mubr.msk.f32.gmra.mxu1 %vm1156_vm1, %v3140_v47 }
 0x182   : > { %1536 = vmatprep.mubr.f32.mxu1 %v2590_v41 }
 0x20f   : > { %v1235_v21 = vpop.f32.mrf.mxu1 }
 0x210   : > { %v1236_v23 = vadd.f32 %v1235_v21, %v3184_v6 }
 0x211   : > { %v1237_v29 = vpop.f32.mrf.mxu1 }
 0x212   : > { %v1238_v20 = vadd.f32 %v1237_v29, %v3184_v6  ;;  %v1432_v26 = vmax.f32 %v1236_v23, 0.0 }
 0x213   : > { %v1241_v35 = vpop.f32.mrf.mxu1 }
 0x214   : > { %v1242_v18 = vadd.f32 %v1241_v35, %v3180_v14  ;;  %v1433_v51 = vmax.f32 %v1238_v20, 0.0 }
 0x215   : > { %v1243_v3 = vpop.f32.mrf.mxu1 }
 0x216   : > { %v1244_v2 = vadd.f32 %v1243_v3, %v3180_v14  ;;  %v1437_v24 = vmax.f32 %v1242_v18, 0.0 }
 0x217   : > { %v1247_v4 = vpop.f32.mrf.mxu1 }
 0x218   : > { %v1248_v16 = vadd.f32 %v1247_v4, %v3175_v42  ;;  %v1438_v57 = vmax.f32 %v1244_v2, 0.0 }
 0x219   : > { %v1249_v7 = vpop.f32.mrf.mxu1 }
 0x21a   : > { %v1250_v13 = vadd.f32 %v1249_v7, %v3175_v42  ;;  %v1442_v55 = vmax.f32 %v1248_v16, 0.0  ;;  %v1464_v7 = vpop.permute.xlu0 %1463 }
 0x21b   : > { %v1253_v9 = vpop.f32.mrf.mxu1 }
 0x21c   : > { %v1254_v10 = vadd.f32 %v1253_v9, %v3173_v44  ;;  %v1443_v22 = vmax.f32 %v1250_v13, 0.0 }
 0x21d   : > { %v1255_v11 = vpop.f32.mrf.mxu1 }
 0x21e   : > { %v1256_v12 = vadd.f32 %v1255_v11, %v3173_v44  ;;  %v1447_v19 = vmax.f32 %v1254_v10, 0.0 }
 0x21f   : > { %v1324_v17 = vpop.f32.mrf.mxu1 }
 0x220   : > { %v1448_v61 = vmax.f32 %v1256_v12, 0.0  ;;  %v1325_v40 = vadd.f32 %v1324_v17, %v3184_v6 }
 0x221   : > { %v1326_v59 = vpop.f32.mrf.mxu1 }
 0x222   : > { %1496 = vmatprep.subr.mxu1 %v1448_v61  ;;  %v1327_v38 = vadd.f32 %v1326_v59, %v3184_v6  ;;  %v1434_v58 = vmax.f32 %v1325_v40, 0.0  ;;  %v1711_v61 = vld [vmem:[%s3267_s7] sm:$0xff] }
 0x223   : > { %v1330_v53 = vpop.f32.mrf.mxu1  ;;  %1497 = vmatpush1.msra.mxu1 %v1447_v19 }
 0x224   : > { %1498 = vmatprep.subr.mxu1 %v1443_v22  ;;  %v1331_v37 = vadd.f32 %v1330_v53, %v3180_v14  ;;  %v1435_v50 = vmax.f32 %v1327_v38, 0.0 }
 0x225   : > { %v1332_v25 = vpop.f32.mrf.mxu1  ;;  %1499 = vmatpush1.msra.mxu1 %v1442_v55 }
 0x226   : > { %1500 = vmatprep.subr.mxu1 %v1438_v57  ;;  %v1333_v34 = vadd.f32 %v1332_v25, %v3180_v14  ;;  %v1439_v56 = vmax.f32 %v1331_v37, 0.0 }
 0x227   : > { %v1336_v27 = vpop.f32.mrf.mxu1  ;;  %1501 = vmatpush1.msra.mxu1 %v1437_v24 }
 0x228   : > { %1502 = vmatprep.subr.mxu1 %v1433_v51  ;;  %v1337_v33 = vadd.f32 %v1336_v27, %v3175_v42  ;;  %v1440_v52 = vmax.f32 %v1333_v34, 0.0 }
 0x229   : > { %v1338_v47 = vpop.f32.mrf.mxu1  ;;  %1503 = vmatpush1.msra.mxu1 %v1432_v26 }
 0x22a   : > { %2218 = vmatmul.mubr.msk.f32.vlgmr.msra.gmra.mxu1 %vm492_vm0, %v1452_v28  ;;  %v1339_v43 = vadd.f32 %v1338_v47, %v3175_v42  ;;  %v1444_v54 = vmax.f32 %v1337_v33, 0.0 }
 0x22b   : > { %v1342_v49 = vpop.f32.mrf.mxu1  ;;  %1542 = vmatprep.mubr.f32.mxu1 %v2590_v41 }
 0x22c   : > { %v1343_v30 = vadd.f32 %v1342_v49, %v3173_v44  ;;  %v1445_v39 = vmax.f32 %v1339_v43, 0.0 }
 0x22d   : > { %v1344_v31 = vpop.f32.mrf.mxu1 }
 0x22e   : > { %v1345_v32 = vadd.f32 %v1344_v31, %v3173_v44  ;;  %2219 = vmatmul.mubr.msk.f32.gmra.mxu1 %vm492_vm0, %v1453_v45  ;;  %v1449_v1 = vmax.f32 %v1343_v30, 0.0 }
 0x22f   : > { %2451 = vmatprep.mubr.msk.f32.mxu1 %vm492_vm0, %v1452_v28 }
 0x230   : > { %v1450_v36 = vmax.f32 %v1345_v32, 0.0  ;;  %v1932_v32 = vpop.permute.xlu0 %1931 }
 0x232   : > { %1573 = vmatprep.subr.mxu0 %v1450_v36 }
 0x233   : > { %1574 = vmatpush1.msra.mxu0 %v1449_v1 }
 0x234   : > { %1575 = vmatprep.subr.mxu0 %v1445_v39 }
 0x235   : > { %1576 = vmatpush1.msra.mxu0 %v1444_v54 }
 0x236   : > { %1577 = vmatprep.subr.mxu0 %v1440_v52 }
 0x237   : > { %1578 = vmatpush1.msra.mxu0 %v1439_v56 }
 0x238   : > { %1579 = vmatprep.subr.mxu0 %v1435_v50 }
 0x239   : > { %1580 = vmatpush1.msra.mxu0 %v1434_v58 }
 0x23a   : > { %2220 = vmatmul.mubr.msk.f32.vlgmr.msra.gmra.mxu0 %vm492_vm0, %v1452_v28 }
 0x23b   : > { %1619 = vmatprep.mubr.f32.mxu0 %v2590_v41 }
 0x23d   : > { %v2439_v62 = vpop.f32.mrf.mxu1 }
 0x23e   : > { %2221 = vmatmul.mubr.msk.f32.gmra.mxu0 %vm492_vm0, %v1453_v45  ;;  %v1419_v8 = vadd.f32 %v2439_v62, %v3180_v14 }
 0x23f   : > { %v1413_v0 = vpop.f32.mrf.mxu1  ;;  %1851 = vmatprep.mubr.f32.mxu0 %v2590_v41 }
 0x240   : > { %v1414_v15 = vadd.f32 %v1413_v0, %v3184_v6  ;;  %v1441_v29 = vmax.f32 %v1419_v8, 0.0 }
 0x241   : > { %v2442_v60 = vpop.f32.mrf.mxu1 }
 0x242   : > { %v1429_v5 = vadd.f32 %v2442_v60, %v3173_v44  ;;  %v1436_v35 = vmax.f32 %v1414_v15, 0.0 }
 0x243   : > { %v1423_v48 = vpop.f32.mrf.mxu1 }
 0x244   : > { %v1451_v63 = vmax.f32 %v1429_v5, 0.0  ;;  %v1424_v46 = vadd.f32 %v1423_v48, %v3175_v42  ;;  %v1459_v42 = vpop.permute.xlu1 %1458 }
 0x246   : > { %v1446_v21 = vmax.f32 %v1424_v46, 0.0  ;;  %2443 = vmatprep.subr.mxu1 %v1451_v63 }
 0x247   : > { %2444 = vmatpush3.msra.mxu1 %v1451_v63 }
 0x248   : > { %2445 = vmatprep.subr.mxu1 %v1446_v21 }
 0x249   : > { %2446 = vmatpush3.msra.mxu1 %v1446_v21 }
 0x24a   : > { %2447 = vmatprep.subr.mxu1 %v1441_v29 }
 0x24b   : > { %2448 = vmatpush3.msra.mxu1 %v1441_v29 }
 0x24c   : > { %2449 = vmatprep.subr.mxu1 %v1436_v35 }
 0x24d   : > { %2450 = vmatpush3.msra.mxu1 %v1436_v35  ;;  %v2592_v35 = vmov 1966171168  }
 0x24e   : > { %2452 = vmatmul.mubr.msk.f32.vlgmr.msra.gmra.mxu1 %vm492_vm0, %v1453_v45  ;;  %v1934_v45 = vlaneseq }
 0x24f   : > { %1780 = vmatprep.mubr.f32.mxu1 %v2590_v41 }
 0x250   : > { %v1935_v30 = vshrl.u32 %v1934_v45, 7  ;;  %vm2020_vm4 = vcmp.lt.s32.totalorder %v1934_v45, 640 }
 0x252   : > { %v1936_v43 = vsub.s32 0, %v1935_v30 }
 0x254   : > { %v1937_v34 = vrot.slane %v1932_v32, %v1936_v43 }
 0x2ea   : > { %v1538_v3 = vpop.f32.mrf.mxu1 }
 0x2eb   : > { %v1539_v12 = vadd.f32 %v1538_v3, %v1459_v42  ;;  %v1981_v3 = vunpack.c.l.s4 %v2592_v35 }
 0x2ec   : > { %v1540_v4 = vpop.f32.mrf.mxu1 }
 0x2ed   : > { %v1541_v11 = vadd.f32 %v1540_v4, %v1459_v42  ;;  %v1701_v2 = vmax.f32 %v1539_v12, 0.0 }
 0x2ee   : > { %v1544_v44 = vpop.f32.mrf.mxu1 }
 0x2ef   : > { %v1545_v9 = vadd.f32 %v1544_v44, %v1464_v7  ;;  %v1702_v17 = vmax.f32 %v1541_v11, 0.0 }
 0x2f0   : > { %v1546_v10 = vpop.f32.mrf.mxu1 }
 0x2f1   : > { %v1547_v13 = vadd.f32 %v1546_v10, %v1464_v7  ;;  %v1706_v16 = vmax.f32 %v1545_v9, 0.0 }
 0x2f3   : > { %v1707_v14 = vmax.f32 %v1547_v13, 0.0 }
 0x2f5   : > { %1744 = vmatprep.subr.mxu1 %v1707_v14 }
 0x2f6   : > { %1745 = vmatpush1.msra.mxu1 %v1706_v16 }
 0x2f7   : > { %1746 = vmatprep.subr.mxu1 %v1702_v17 }
 0x2f8   : > { %1747 = vmatpush1.msra.mxu1 %v1701_v2 }
 0x2f9   : > { %2224 = vmatmul.mubr.msk.f32.vlgmr.msra.gmra.mxu1 %vm1712_vm2, %v1711_v61  ;;  %2454 = vmatprep.subr.mxu1 %v2590_v41 }
 0x2fa   : > { %v1615_v6 = vpop.f32.mrf.mxu0  ;;  %2458 = vmatprep.mubr.msk.f32.mxu1 %vm2591_vm3, %v2590_v41 }
 0x2fb   : > { %v1616_v55 = vadd.f32 %v1615_v6, %v1459_v42 }
 0x2fc   : > { %v1617_v18 = vpop.f32.mrf.mxu0 }
 0x2fd   : > { %v1618_v22 = vadd.f32 %v1617_v18, %v1459_v42  ;;  %v1703_v25 = vmax.f32 %v1616_v55, 0.0 }
 0x2fe   : > { %v1621_v19 = vpop.f32.mrf.mxu0 }
 0x2ff   : > { %v1622_v59 = vadd.f32 %v1621_v19, %v1464_v7  ;;  %v1704_v24 = vmax.f32 %v1618_v22, 0.0 }
 0x300   : > { %v1623_v20 = vpop.f32.mrf.mxu0 }
 0x301   : > { %v1624_v23 = vadd.f32 %v1623_v20, %v1464_v7  ;;  %v1708_v57 = vmax.f32 %v1622_v59, 0.0 }
 0x303   : > { %v1709_v53 = vmax.f32 %v1624_v23, 0.0 }
 0x305   : > { %1815 = vmatprep.subr.mxu0 %v1709_v53 }
 0x306   : > { %1816 = vmatpush1.msra.mxu0 %v1708_v57 }
 0x307   : > { %1817 = vmatprep.subr.mxu0 %v1704_v24 }
 0x308   : > { %1818 = vmatpush1.msra.mxu0 %v1703_v25 }
 0x309   : > { %2225 = vmatmul.mubr.msk.f32.vlgmr.msra.gmra.mxu0 %vm1712_vm2, %v1711_v61 }
 0x30e   : > { %v2453_v51 = vpop.f32.mrf.mxu1 }
 0x30f   : > { %v1698_v26 = vadd.f32 %v2453_v51, %v1464_v7 }
 0x310   : > { %v1692_v27 = vpop.f32.mrf.mxu1 }
 0x311   : > { %v1710_v28 = vmax.f32 %v1698_v26, 0.0  ;;  %v1693_v47 = vadd.f32 %v1692_v27, %v1459_v42  ;;  %v1982_v42 = vunpack.c.0.s8 %v1981_v3 }
 0x313   : > { %v1705_v49 = vmax.f32 %v1693_v47, 0.0  ;;  %2455 = vmatpush3.msra.mxu1 %v1710_v28  ;;  %v1985_v13 = vsub.s32 %v1982_v42, %v1935_v30 }
 0x314   : > { %2456 = vmatprep.subr.mxu1 %v2590_v41 }
 0x315   : > { %2457 = vmatpush3.msra.mxu1 %v1705_v49 }
 0x316   : > { %2459 = vmatmul.mubr.msk.f32.vlgmr.msra.gmra.mxu1 %vm1712_vm2, %v1711_v61 }
 0x3b9   : > { %v1782_v31 = vpop.f32.mrf.mxu1 }
 0x3ba   : > { %v1938_v37 = vadd.f32 %v1937_v34, %v1782_v31 }
 0x3bb   : > { %v1784_v33 = vpop.f32.mrf.mxu1 }
 0x3bc   : > { %v1939_v36 = vadd.f32 %v1937_v34, %v1784_v33  ;;  %v2227_v39 = vmul.f32 -1.442695, %v1938_v37 }
 0x3be   : > { %v2228_v1 = vmul.f32 -1.442695, %v1939_v36 }
 0x3c0   : > { %2507 = vpow2.f32 %v2228_v1 }
 0x3c1   : > { %2509 = vpow2.f32 %v2227_v39 }
 0x3c9   : > { %v1853_v38 = vpop.f32.mrf.mxu0 }
 0x3ca   : > { %v1940_v40 = vadd.f32 %v1937_v34, %v1853_v38 }
 0x3cb   : > { %v1855_v54 = vpop.f32.mrf.mxu0 }
 0x3cc   : > { %v2229_v52 = vmul.f32 -1.442695, %v1940_v40  ;;  %v1941_v41 = vadd.f32 %v1937_v34, %v1855_v54 }
 0x3cd   : > { %v2508_v62 = vpop.eup %2507 }
 0x3ce   : > { %v2230_v56 = vmul.f32 -1.442695, %v1941_v41  ;;  %2511 = vpow2.f32 %v2229_v52  ;;  %v2510_v5 = vpop.eup %2509  ;;  %v1959_v48 = vadd.f32 1.0, %v2508_v62 }
 0x3cf   : > { %v1958_v15 = vadd.f32 1.0, %v2510_v5 }
 0x3d0   : > { %2513 = vpow2.f32 %v2230_v56 }
 0x3d6   : > { %v1924_v50 = vpop.f32.mrf.mxu1 }
 0x3d7   : > { %v1942_v58 = vadd.f32 %v1937_v34, %v1924_v50 }
 0x3d8   : > { %v2460_v0 = vpop.f32.mrf.mxu1 }
 0x3d9   : > { %v2231_v60 = vmul.f32 -1.442695, %v1942_v58 }
 0x3db   : > { %2515 = vpow2.f32 %v2231_v60  ;;  %v2512_v8 = vpop.eup %2511 }
 0x3dc   : > { %v1960_v63 = vadd.f32 1.0, %v2512_v8  ;;  %2517 = vrcp.f32 %v1959_v48 }
 0x3dd   : > { %v2514_v46 = vpop.eup %2513 }
 0x3de   : > { %v1961_v21 = vadd.f32 1.0, %v2514_v46  ;;  %2519 = vrcp.f32 %v1960_v63 }
 0x3e0   : > { %2521 = vrcp.f32 %v1961_v21 }
 0x3e1   : > { %2523 = vrcp.f32 %v1958_v15 }
 0x3e8   : > { %v2516_v29 = vpop.eup %2515 }
 0x3e9   : > { %v1962_v4 = vadd.f32 1.0, %v2516_v29  ;;  %v2518_v44 = vpop.eup %2517 }
 0x3eb   : > { %2525 = vrcp.f32 %v1962_v4  ;;  %v2520_v7 = vpop.eup %2519 }
 0x3ed   : > { %v2522_v9 = vpop.eup %2521 }
 0x3ee   : > { %v1979_v10 = vcombine.low %v2520_v7, %v2522_v9  ;;  %v2524_v11 = vpop.eup %2523 }
 0x3ef   : > { %v1978_v12 = vcombine.low %v2524_v11, %v2518_v44 }
 0x3f0   : > { %v1993_v14 = vrot.slane %v1979_v10, %v1985_v13 }
 0x3f1   : > { %v1986_v16 = vrot.slane %v1978_v12, %v1985_v13 }
 0x3f3   : > { %v2001_v17 = vcombine.low %v1986_v16, %v1993_v14 }
 0x3f5   : > { %v2008_v6 = vrot.slane %v2001_v17, %v1985_v13 }
 0x3f8   : > { %v2526_v2 = vpop.eup %2525 }
 0x3f9   : > { %v2000_v61 = vrot.slane %v2526_v2, %v1985_v13 }
 0x3fb   : > { %v2015_v18 = vrot.slane %v2000_v61, %v1985_v13 }
 0x3fd   : > { %v2016_v19 = vcombine.low %v2008_v6, %v2015_v18 }
 0x3ff   : > { %2022 = vst.msk [vmem:[%s340_s25] sm:$0x1f] %vm2020_vm4, %v2016_v19 }
 0x400   : > { %2540 = shalt.err (!%p2537_p3)
}
 0x401   : > { %s2541_s18 = scalar_lea.hbm %s2036_s29, 80  ;;  %s2545_s24 = scalar_lea.hbm %s3269_s9, 160 }
 0x402   : > { %p2542_p4 = scmp.ne.s32.totalorder %s2036_s29, %s2541_s18  ;;  %p2546_p9 = scmp.lt.s32.totalorder %s2036_s29, %s3269_s9 }
 0x403   : > { %p2547_p10 = scmp.lt.s32.totalorder %s2545_s24, %s2541_s18 }
 0x404   : > { %p2543_p7 = pnand %p2542_p4, %p2682_p5 }
 0x405   : > { %p2548_p11 = por %p2547_p10, %p2546_p9 }
 0x406   : > { %p2544_p8 = pneg %p2543_p7 }
 0x408   : > { %p2549_p12 = pnand %p2548_p11, %p2544_p8 }
 0x40a   : > { %2552 = shalt.err (!%p2549_p12)
}
 0x40b   : > { %2462 = dma.vmem_to_hbm [thread:$0]  (%p2682_p5), %s2039_s26, 80, %s2036_s29, %s2024_s30  }
 0x40c PF: > { %p2468_p13 = scmp.ge.s32.totalorder %s2587_s14, 2  ;;  %s2050_s28 = sand.u32 1, %s2575_s11  }
 0x40d   : > { %s2051_s10 = scalar_lea.sflag [#allocation4], %s2050_s28 }
 0x40e   : > { %p2465_p0 = pnand %p2468_p13, %p2686_p6 }
 0x410   : > { %p2466_p1 = pneg %p2465_p0 }
 0x412   : > { %2570 = dma.done.wait (%p2466_p1), %s2051_s10, 80  }
 0x413   : > { %2572 = vsyncadd (%p2466_p1), %s2051_s10, 4294967216  ;;  %p21_p2 = scmp.ge.s32.totalorder %s2670_s16, 4   ;;  %s3272_s11 = smov %s2579_s12 }
 0x414   : > { %s3273_s12 = smov %s2583_s13  ;;  %s3274_s13 = smov %s2680_s19 }
 0x415   : > { %s3275_s14 = smov %s2670_s16  ;;  %23 = sbr.rel (!%p21_p2) target bundleno = 6 (0x6), region = 91 }
 0x41a   :  { %2056 = vsyncpa [#allocation4], 1 }
 0x41b   :  { %2058 = vsyncpa [#allocation4 + $0x1], 1 }

</bundles_post_ra>
